<compile_context>
chip_gen: v7x
topology: tpu7x:2x2x1
jax: 0.10.0
libtpu: 0.0.40
codegen_flags: <defaults>
</compile_context>

<pallas_src>
import functools

import jax
import jax.numpy as jnp
from jax.experimental import pallas as pl
from jax.experimental.pallas import tpu as pltpu

F32 = jnp.float32
BF16 = jnp.bfloat16


def _vmem_limit_bytes():
    # Generation-aware scoped-VMEM cap: 3/4 of physical, <= 96 MiB
    # (v5e/v6e: 128 MiB physical -> 96 MiB; v7x: 64 MiB -> 48 MiB).
    try:
        cap = int(pltpu.get_tpu_info().vmem_capacity_bytes)
        return int(min(cap * 3 // 4, 96 * 1024 * 1024))
    except Exception:
        return 64 * 1024 * 1024


VMEM_LIMIT = _vmem_limit_bytes()


# ----------------------------------------------------------------------------
# Small elementwise helpers (plain JAX glue)
# ----------------------------------------------------------------------------

def bn_affine(p, eps=1e-5):
    # BatchNorm1d eval with fresh running stats (mean=0, var=1).
    return p['gamma'] / jnp.sqrt(1.0 + eps), p['beta']


def bn_eval(x, p, eps=1e-5):
    s, b = bn_affine(p, eps)
    return s * x + b


def layer_norm(x, gamma, beta, eps=1e-5):
    mu = jnp.mean(x, axis=-1, keepdims=True)
    var = jnp.mean((x - mu) ** 2, axis=-1, keepdims=True)
    return gamma * (x - mu) / jnp.sqrt(var + eps) + beta


def _pack_vecs(rows, do):
    """Pack a few [do] vectors into one (8, do) block (single kernel input)."""
    mat = jnp.stack([jnp.asarray(r, F32).reshape(do) for r in rows], axis=0)
    pad = jnp.zeros((8 - mat.shape[0], do), F32)
    return jnp.concatenate([mat, pad], axis=0)


# ----------------------------------------------------------------------------
# Tiled linear:  y = x @ w + b   (bf16 operands, f32 accumulation)
# ----------------------------------------------------------------------------

def _linear_kernel(x_ref, w_ref, b_ref, o_ref):
    o_ref[...] = (jnp.dot(x_ref[...], w_ref[...],
                          preferred_element_type=jnp.float32)
                  + b_ref[...]).astype(o_ref.dtype)


def linear(x, w, b=None, tile_m=512, out_dtype=F32):
    """nn.Linear on [..., K] with an M-tiled, pipelined Pallas matmul."""
    K = x.shape[-1]
    Nout = w.shape[1]
    x2 = x.reshape(-1, K).astype(BF16)
    M = x2.shape[0]
    if b is None:
        b = jnp.zeros((Nout,), F32)
    b2 = jnp.asarray(b, F32).reshape(1, Nout)
    if M <= tile_m:
        tm, x_pad = M, x2
    else:
        tm = tile_m                                   # multiple of 128 (MXU friendly)
        mp = pl.cdiv(M, tm) * tm
        x_pad = jnp.pad(x2, ((0, mp - M), (0, 0)))
    grid = (x_pad.shape[0] // tm,)
    out = pl.pallas_call(
        _linear_kernel,
        grid=grid,
        in_specs=[pl.BlockSpec((tm, K), lambda i: (i, 0)),
                  pl.BlockSpec((K, Nout), lambda i: (0, 0)),
                  pl.BlockSpec((1, Nout), lambda i: (0, 0))],
        out_specs=pl.BlockSpec((tm, Nout), lambda i: (i, 0)),
        out_shape=jax.ShapeDtypeStruct((x_pad.shape[0], Nout), out_dtype),
        compiler_params=pltpu.CompilerParams(
            dimension_semantics=("parallel",),
            vmem_limit_bytes=VMEM_LIMIT),
    )(x_pad, w.astype(BF16), b2)
    if out.shape[0] != M:
        out = out[:M]
    return out.reshape(x.shape[:-1] + (Nout,))


# ----------------------------------------------------------------------------
# Fused GatedGCN layer: Ce matmul + gates + aggregation + BN + ReLU + residual
# (src-axis tiled; e stored in bf16; h accumulated in VMEM scratch)
# ----------------------------------------------------------------------------

@functools.lru_cache(maxsize=None)
def _make_ggcn_kernel(ts, do, residual):
    def kernel(np_ref, h_ref, e_ref, adj_ref, cw_ref, vec_ref,
               ho_ref, eo_ref, num_acc, den_acc):
        s = pl.program_id(1)
        ns = pl.num_programs(1)

        @pl.when(s == 0)
        def _():
            num_acc[...] = jnp.zeros_like(num_acc)
            den_acc[...] = jnp.zeros_like(den_acc)

        vec = vec_ref[...]                               # (8, do) f32
        c_b = vec[0:1, :]
        bnh_s, bnh_b = vec[1:2, :], vec[2:3, :]
        bne_s, bne_b = vec[3:4, :], vec[4:5, :]

        npd = np_ref[0]                                  # (N, 4*do) bf16, dst view
        src0 = pl.multiple_of(s * ts, ts)
        nps = np_ref[0, pl.ds(src0, ts), :]              # (ts, 4*do) bf16, src tile
        Eh = npd[:, 3 * do:4 * do].astype(jnp.float32)   # dst-indexed
        Bh = nps[:, do:2 * do].astype(jnp.float32)       # src-indexed
        Dh = nps[:, 2 * do:3 * do].astype(jnp.float32) + c_b   # fold Ce bias once

        e_in = e_ref[0]                                  # (ts, N, di) bf16
        di = e_in.shape[-1]
        n_dst = e_in.shape[1]
        adj = adj_ref[0].astype(jnp.float32)             # (ts, N)

        # Ce = e @ C : one large-M bf16 MXU matmul, f32 accumulation.
        ce = jnp.dot(e_in.reshape(ts * n_dst, di), cw_ref[...],
                     preferred_element_type=jnp.float32).reshape(ts, n_dst, do)
        e_full = Dh[:, None, :] + Eh[None, :, :] + ce

        sigma = jax.nn.sigmoid(e_full) * adj[:, :, None]
        num_acc[...] += jnp.sum(sigma * Bh[:, None, :], axis=0)
        den_acc[...] += jnp.sum(sigma, axis=0)

        # Fused edge epilogue: BN(eval) + ReLU (+ residual), bf16 writeback.
        e_new = jnp.maximum(bne_s[None, :, :] * e_full + bne_b[None, :, :], 0.0)
        if residual:
            e_new = e_new + e_in.astype(jnp.float32)
        eo_ref[0] = e_new.astype(eo_ref.dtype)

        @pl.when(s == ns - 1)
        def _():
            Ah = npd[:, 0:do].astype(jnp.float32)
            # Reference semantics: isolated nodes get Ah (num=0, den=eps).
            h_agg = Ah + num_acc[...] / (den_acc[...] + 1e-6)
            h_new = jnp.maximum(bnh_s * h_agg + bnh_b, 0.0)
            if residual:
                h_new = h_new + h_ref[0]
            ho_ref[0] = h_new.astype(ho_ref.dtype)

    return kernel


def ggcn_fused_layer(p, h, e, adj, ts):
    """One GatedGCNLayer (eval mode), fully fused."""
    B, N, di_h = h.shape
    do = p['A'][0].shape[1]
    di_e = e.shape[-1]
    w_node = jnp.concatenate([p['A'][0], p['B'][0], p['D'][0], p['E'][0]], 1)
    b_node = jnp.concatenate([p['A'][1], p['B'][1], p['D'][1], p['E'][1]])
    nproj = linear(h, w_node, b_node, out_dtype=BF16)    # [B, N, 4*do] lane-dense
    bnh_s, bnh_b = bn_affine(p['bn_h'])
    bne_s, bne_b = bn_affine(p['bn_e'])
    vecs = _pack_vecs([p['C'][1], bnh_s, bnh_b, bne_s, bne_b], do)
    kernel = _make_ggcn_kernel(ts, do, bool(p['residual']))
    n_s = N // ts
    return pl.pallas_call(
        kernel,
        grid=(B, n_s),
        in_specs=[
            pl.BlockSpec((1, N, 4 * do), lambda b, s: (b, 0, 0)),       # nproj bf16
            pl.BlockSpec((1, N, di_h), lambda b, s: (b, 0, 0)),         # h f32
            pl.BlockSpec((1, ts, N, di_e), lambda b, s: (b, s, 0, 0)),  # e bf16
            pl.BlockSpec((1, ts, N), lambda b, s: (b, s, 0)),           # adj bf16
            pl.BlockSpec((di_e, do), lambda b, s: (0, 0)),              # C weight bf16
            pl.BlockSpec((8, do), lambda b, s: (0, 0)),
        ],
        out_specs=(pl.BlockSpec((1, N, do), lambda b, s: (b, 0, 0)),
                   pl.BlockSpec((1, ts, N, do), lambda b, s: (b, s, 0, 0))),
        out_shape=(jax.ShapeDtypeStruct((B, N, do), F32),
                   jax.ShapeDtypeStruct((B, N, N, do), BF16)),
        scratch_shapes=[pltpu.VMEM((N, do), F32),
                        pltpu.VMEM((N, do), F32)],
        compiler_params=pltpu.CompilerParams(
            dimension_semantics=("parallel", "arbitrary"),
            vmem_limit_bytes=VMEM_LIMIT),
    )(nproj, h, e, adj, p['C'][0].astype(BF16), vecs)


# Specialized variant for the MEFG global layers: e == ones (Ce is a constant
# row) and the updated e is never consumed -> skip the Ce matmul and the whole
# e output/epilogue.
@functools.lru_cache(maxsize=None)
def _make_ggcn_ones_kernel(ts, do):
    def kernel(np_ref, h_ref, adj_ref, vec_ref, ho_ref, num_acc, den_acc):
        s = pl.program_id(1)
        ns = pl.num_programs(1)

        @pl.when(s == 0)
        def _():
            num_acc[...] = jnp.zeros_like(num_acc)
            den_acc[...] = jnp.zeros_like(den_acc)

        vec = vec_ref[...]
        ce_c = vec[0:1, :]
        bnh_s, bnh_b = vec[1:2, :], vec[2:3, :]

        npd = np_ref[0]                                  # (N, 4*do) bf16
        src0 = pl.multiple_of(s * ts, ts)
        nps = np_ref[0, pl.ds(src0, ts), :]              # (ts, 4*do) bf16
        Eh = npd[:, 3 * do:4 * do].astype(jnp.float32)
        Bh = nps[:, do:2 * do].astype(jnp.float32)
        Dh = nps[:, 2 * do:3 * do].astype(jnp.float32) + ce_c   # fold const Ce row
        adj = adj_ref[0].astype(jnp.float32)

        e_full = Dh[:, None, :] + Eh[None, :, :]
        sigma = jax.nn.sigmoid(e_full) * adj[:, :, None]
        num_acc[...] += jnp.sum(sigma * Bh[:, None, :], axis=0)
        den_acc[...] += jnp.sum(sigma, axis=0)

        @pl.when(s == ns - 1)
        def _():
            Ah = npd[:, 0:do].astype(jnp.float32)
            h_agg = Ah + num_acc[...] / (den_acc[...] + 1e-6)
            h_new = jnp.maximum(bnh_s * h_agg + bnh_b, 0.0) + h_ref[0]  # residual
            ho_ref[0] = h_new.astype(ho_ref.dtype)

    return kernel


def ggcn_ones_layer(p, h, adj, ts):
    B, N, di_h = h.shape
    do = p['A'][0].shape[1]
    w_node = jnp.concatenate([p['A'][0], p['B'][0], p['D'][0], p['E'][0]], 1)
    b_node = jnp.concatenate([p['A'][1], p['B'][1], p['D'][1], p['E'][1]])
    nproj = linear(h, w_node, b_node, out_dtype=BF16)
    bnh_s, bnh_b = bn_affine(p['bn_h'])
    ce_const = jnp.sum(p['C'][0], axis=0) + p['C'][1]    # ones @ C + bias
    vecs = _pack_vecs([ce_const, bnh_s, bnh_b], do)
    kernel = _make_ggcn_ones_kernel(ts, do)
    n_s = N // ts
    return pl.pallas_call(
        kernel,
        grid=(B, n_s),
        in_specs=[
            pl.BlockSpec((1, N, 4 * do), lambda b, s: (b, 0, 0)),
            pl.BlockSpec((1, N, di_h), lambda b, s: (b, 0, 0)),
            pl.BlockSpec((1, ts, N), lambda b, s: (b, s, 0)),
            pl.BlockSpec((8, do), lambda b, s: (0, 0)),
        ],
        out_specs=pl.BlockSpec((1, N, do), lambda b, s: (b, 0, 0)),
        out_shape=jax.ShapeDtypeStruct((B, N, do), F32),
        scratch_shapes=[pltpu.VMEM((N, do), F32),
                        pltpu.VMEM((N, do), F32)],
        compiler_params=pltpu.CompilerParams(
            dimension_semantics=("parallel", "arbitrary"),
            vmem_limit_bytes=VMEM_LIMIT),
    )(nproj, h, adj, vecs)


# ----------------------------------------------------------------------------
# MEFG edge build: e0[u, v] = relu(row[u] + col[v])   (bf16, src-tiled)
# ----------------------------------------------------------------------------

def _edge_build_kernel(row_ref, col_ref, eo_ref):
    eo_ref[0] = jnp.maximum(
        row_ref[0][:, None, :] + col_ref[0][None, :, :], 0.0
    ).astype(eo_ref.dtype)


def build_edge(row, col, ts):
    B, N, H = row.shape
    n_s = N // ts
    return pl.pallas_call(
        _edge_build_kernel,
        grid=(B, n_s),
        in_specs=[pl.BlockSpec((1, ts, H), lambda b, s: (b, s, 0)),
                  pl.BlockSpec((1, N, H), lambda b, s: (b, 0, 0))],
        out_specs=pl.BlockSpec((1, ts, N, H), lambda b, s: (b, s, 0, 0)),
        out_shape=jax.ShapeDtypeStruct((B, N, N, H), BF16),
        compiler_params=pltpu.CompilerParams(
            dimension_semantics=("parallel", "parallel"),
            vmem_limit_bytes=VMEM_LIMIT),
    )(row, col)


# ----------------------------------------------------------------------------
# Linear attention (LoFTR-style), with exact "rep" correction for a source
# whose tokens are each repeated `rep` times (so the N^2-token repeat/tile
# tensors are never materialized).  Masks are folded into q/k beforehand.
# All B graphs are handled in a single grid step (per-b dots unrolled).
# ----------------------------------------------------------------------------

@functools.lru_cache(maxsize=None)
def _make_linattn_kernel(B, rep, ltot):
    def kernel(qf_ref, kf_ref, vm_ref, o_ref):
        for b in range(B):                                # static unroll, tiny work
            qf = qf_ref[b]                                # (L, H)
            kf = kf_ref[b]                                # (S, H)
            vm = vm_ref[b]                                # (S, H)
            kv = jnp.dot(kf.T, vm, preferred_element_type=jnp.float32)    # (H, H)
            ksum = jnp.sum(kf, axis=0, keepdims=True) * rep               # (1, H)
            z = pl.reciprocal(jnp.sum(qf * ksum, axis=-1, keepdims=True) + 1e-6,
                              approx=True)
            o_ref[b] = jnp.dot(qf, kv, preferred_element_type=jnp.float32) * z * ltot
    return kernel


def linear_attention(qf, kf, vsc, rep, ltot):
    B, L, H = qf.shape
    S = kf.shape[1]
    kernel = _make_linattn_kernel(int(B), float(rep), float(ltot))
    return pl.pallas_call(
        kernel,
        grid=(1,),
        in_specs=[pl.BlockSpec((B, L, H), lambda i: (0, 0, 0)),
                  pl.BlockSpec((B, S, H), lambda i: (0, 0, 0)),
                  pl.BlockSpec((B, S, H), lambda i: (0, 0, 0))],
        out_specs=pl.BlockSpec((B, L, H), lambda i: (0, 0, 0)),
        out_shape=jax.ShapeDtypeStruct((B, L, H), F32),
        compiler_params=pltpu.CompilerParams(
            dimension_semantics=("arbitrary",),
            vmem_limit_bytes=VMEM_LIMIT),
    )(qf, kf, vsc)


def cross_encoder(p, x, source, x_mask, source_mask, rep):
    B, L, _ = x.shape
    S = source.shape[1]
    q = linear(x, p['q_w'])
    k = linear(source, p['k_w'])
    v = linear(source, p['v_w'])
    qm = x_mask if x_mask is not None else jnp.ones((B, L), F32)
    km = source_mask if source_mask is not None else jnp.ones((B, S), F32)
    elu1 = lambda t: jnp.where(t > 0, t + 1.0, jnp.exp(t))     # elu(x) + 1
    qf = elu1(q) * qm[..., None]
    kf = elu1(k) * km[..., None]
    vsc = v * km[..., None] * (float(rep) / float(S * rep))
    msg = linear_attention(qf, kf, vsc, rep, S * rep)
    msg = linear(msg, p['merge_w'])
    msg = layer_norm(msg, p['ln1_g'], p['ln1_b'])
    y = jnp.concatenate([x, msg], axis=-1)
    y = jax.nn.relu(linear(y, p['mlp1_w']))
    msg = linear(y, p['mlp2_w'])
    msg = layer_norm(msg, p['ln2_g'], p['ln2_b'])
    return x + msg


def cross_transformer(p, qfea, kfea, mask0):
    """Returns r[b, j]; the reference edge tensor satisfies edge[b,i,j] = r[b,j]."""
    B, N, _ = qfea.shape
    src_vcr = kfea[:, None, :]                      # global feature, 1 token
    m1 = jnp.ones((B, 1), F32)
    for _ in range(p['layer_nums']):                # VCR layers (shared params)
        qfea = cross_encoder(p['enc'], qfea, src_vcr, mask0, m1, rep=N)
    # VVR stage on N tokens with exact rep=N correction: qfea_start[b, i*N+j]
    # equals qfea[b, j] and the attention state is batch-global, so the output
    # depends on j only.
    src_vvr = qfea
    x = qfea
    for _ in range(p['layer_nums']):                # VVR layers (same params)
        x = cross_encoder(p['enc'], x, src_vvr, None, None, rep=N)
    return x


# ----------------------------------------------------------------------------
# TTP: score + mask + double softmax + threshold + adjacency union, fused
# ----------------------------------------------------------------------------

@functools.lru_cache(maxsize=None)
def _make_ttp_kernel(thresh):
    def kernel(q1_ref, hp2_ref, gb_ref, mr_ref, mc_ref, adj_ref, out_ref):
        q1 = q1_ref[0]                                            # (N, H)
        hp2 = hp2_ref[0]                                          # (N, H)
        score = jax.lax.dot_general(
            q1, hp2, (((1,), (1,)), ((), ())),
            preferred_element_type=jnp.float32) + gb_ref[...]     # q1 @ hp2.T + g_b
        N = score.shape[0]
        ri = jax.lax.broadcasted_iota(jnp.int32, (N, N), 0)
        ci = jax.lax.broadcasted_iota(jnp.int32, (N, N), 1)
        score = jnp.where(ri == ci, 0.0, score)                   # zero diagonal
        pair = mc_ref[0] * mr_ref[0]                              # (N,1)*(1,N)
        score = jnp.where(pair > 0.0, score, -1e30)               # pad mask
        m0 = jnp.max(score, axis=0, keepdims=True)
        p0 = jnp.exp(score - m0)
        sm0 = p0 / jnp.sum(p0, axis=0, keepdims=True)
        m1 = jnp.max(score, axis=1, keepdims=True)
        p1 = jnp.exp(score - m1)
        sm1 = p1 / jnp.sum(p1, axis=1, keepdims=True)
        matrix = sm0 * sm1 * pair
        new_e = (matrix > thresh).astype(jnp.float32)
        out_ref[0] = jnp.maximum(adj_ref[0].astype(jnp.float32),
                                 new_e).astype(out_ref.dtype)
    return kernel


def ttp_new_adj(q1, hp2, gb, mrow, mcol, adj, thresh):
    B, N, H = q1.shape
    kernel = _make_ttp_kernel(float(thresh))
    return pl.pallas_call(
        kernel,
        grid=(B,),
        in_specs=[pl.BlockSpec((1, N, H), lambda b: (b, 0, 0)),
                  pl.BlockSpec((1, N, H), lambda b: (b, 0, 0)),
                  pl.BlockSpec((1, 1), lambda b: (0, 0)),
                  pl.BlockSpec((1, 1, N), lambda b: (b, 0, 0)),
                  pl.BlockSpec((1, N, 1), lambda b: (b, 0, 0)),
                  pl.BlockSpec((1, N, N), lambda b: (b, 0, 0))],
        out_specs=pl.BlockSpec((1, N, N), lambda b: (b, 0, 0)),
        out_shape=jax.ShapeDtypeStruct((B, N, N), BF16),
        compiler_params=pltpu.CompilerParams(
            dimension_semantics=("parallel",),
            vmem_limit_bytes=VMEM_LIMIT),
    )(q1, hp2, gb, mrow, mcol, adj)


def ttp(p, feat, adj, node_mask, hidden_dim, edge_thresh):
    B, N, _ = feat.shape
    H = hidden_dim
    hp1 = jax.nn.relu(bn_eval(linear(feat, p['g1'][0], p['g1'][1]), p['bn_g1']))
    hp2 = jax.nn.relu(bn_eval(linear(feat, p['g2'][0], p['g2'][1]), p['bn_g2']))
    # proj_g contraction (replaces the dense Kronecker selection matmul):
    # score[n, m] = sum_h1 g_w[h1] * <hp1[n, h1, :], hp2[m, :]> + g_b
    g_w = p['g'][0][:, 0]
    gb = jnp.reshape(p['g'][1], (1, 1)).astype(F32)
    q1 = jnp.einsum('bnij,i->bnj', hp1.reshape(B, N, H, H), g_w)
    mrow = node_mask.reshape(B, 1, N)
    mcol = node_mask.reshape(B, N, 1)
    return ttp_new_adj(q1, hp2, gb, mrow, mcol, adj.astype(BF16), edge_thresh)


# ----------------------------------------------------------------------------
# MEFG
# ----------------------------------------------------------------------------

def mefg(p, feat, h, adj, node_mask, ts):
    B, N, _ = feat.shape
    # Conv1d(2->1, k=3, pad=1) over [src; dst] rows == sum of two banded
    # matmuls, so lr_e_local[u, v] = a_src[u] + a_dst[v] (never materialized).
    c_src = linear(feat, p['conv_M0'])
    c_dst = linear(feat, p['conv_M1']) + p['conv_b']
    a_src = linear(c_src, p['ep2'][0])
    a_dst = linear(c_dst, p['ep2'][0], p['ep2'][1])
    # Padded per-graph node features, projected (edge_proj3).
    hs = linear(feat * node_mask[..., None], p['ep3'][0], p['ep3'][1])
    # Global GatedGCN layers on (h, e = ones): specialized kernel, no e traffic.
    hs2g = h
    for lp in p['global_layers']:
        hs2g = ggcn_ones_layer(lp, hs2g, adj, ts)
    ng = jnp.sum(node_mask, axis=1, keepdims=True)
    global_g = jnp.sum(hs2g * node_mask[..., None], axis=1) / ng   # mean_nodes
    # CrossTransformer: edge[b, i, j] depends only on dst j -> per-dst vector.
    vvr = cross_transformer(p['crosst'], hs, global_g, node_mask)
    g_dst = linear(vvr, p['ep4'][0], p['ep4'][1])
    # e = relu(BN(1 + lr_e_local + lr_e_global)), built once directly as bf16.
    bne_s, bne_b = bn_affine(p['bn_lr_e'])
    row = bne_s * a_src
    col = bne_s * (1.0 + a_dst + g_dst) + bne_b
    return build_edge(row, col, ts)


# ----------------------------------------------------------------------------
# Full network
# ----------------------------------------------------------------------------

def _pick_src_tile(N, H, vmem_budget):
    """Biggest src tile (multiple of 8, dividing N) fitting the VMEM budget."""
    if N % 8 != 0:
        return N
    # per-src-row bytes (double-buffered bf16 e-in + e-out tiles + adj row)
    per_row = 2 * (N * H * 2) * 2 + 2 * (N * 2)
    # resident blocks: nproj (bf16, 2x), h (f32, 2x), scratch accumulators
    resident = 2 * (N * 4 * H * 2) + 2 * (N * H * 4) + 2 * (N * H * 4) + 8 * H * 4
    avail = max(vmem_budget - resident, per_row * 8)
    ts = max(8, min(N, (avail // per_row) // 8 * 8))
    while N % ts != 0:
        ts -= 8
    return max(ts, 8)


def gated_gcn_net(params, feat, adj, node_mask, src_tile=None):
    B, N, _ = feat.shape
    H = params['hidden_dim']
    ts = src_tile if src_tile is not None else _pick_src_tile(N, H, VMEM_LIMIT)
    # TTP: threshold-based edge augmentation (adjacency emitted in bf16).
    adj = ttp(params['ttp'], feat, adj, node_mask, H, params['edge_thresh'])
    # Node embedding.
    h = linear(feat, params['emb_h'][0], params['emb_h'][1])
    # MEFG edge features (bf16 [B, N, N, H]).
    e = mefg(params['mefg'], feat, h, adj, node_mask, ts)
    # GatedGCN stack (fused projections + message passing + BN/ReLU/residual).
    for lp in params['layers']:
        h, e = ggcn_fused_layer(lp, h, e, adj, ts)
    # Mean readout over real nodes.
    ng = jnp.sum(node_mask, axis=1, keepdims=True)
    hg = jnp.sum(h * node_mask[..., None], axis=1) / ng
    # MLPReadout.
    y = hg
    for i in range(2):
        y = jax.nn.relu(linear(y, params['mlp'][i][0], params['mlp'][i][1]))
    y = linear(y, params['mlp'][2][0], params['mlp'][2][1])
    return y


# ----------------------------------------------------------------------------
# Deterministic parameter initialization
# ----------------------------------------------------------------------------

def init_params(key, in_dim, hidden_dim, out_dim, n_classes, n_layers,
                global_layer_num=2):
    keys = iter(jax.random.split(key, 256))

    def lin(fi, fo, bias=True):
        bound = 1.0 / (fi ** 0.5)
        w = jax.random.uniform(next(keys), (fi, fo), F32, -bound, bound)
        b = (jax.random.uniform(next(keys), (fo,), F32, -bound, bound)
             if bias else None)
        return (w, b)

    def bn(c):
        return {'gamma': jnp.ones((c,), F32), 'beta': jnp.zeros((c,), F32)}

    def ggcn_p(di, do):
        return {'A': lin(di, do), 'B': lin(di, do), 'C': lin(di, do),
                'D': lin(di, do), 'E': lin(di, do),
                'bn_h': bn(do), 'bn_e': bn(do), 'residual': di == do}

    H = hidden_dim
    ttp_p = {'g1': lin(in_dim, H * H), 'bn_g1': bn(H * H),
             'g2': lin(in_dim, H), 'bn_g2': bn(H),
             'g': lin(H, 1)}

    # MEFG Conv1d(2, 1, kernel_size=3, padding=1) rewritten as banded matrices.
    cb = 1.0 / ((2 * 3) ** 0.5)
    conv_w = jax.random.uniform(next(keys), (1, 2, 3), F32, -cb, cb)
    conv_bias = jax.random.uniform(next(keys), (1,), F32, -cb, cb)

    def band(w3):
        return (jnp.eye(in_dim, dtype=F32) * w3[1]
                + jnp.eye(in_dim, k=1, dtype=F32) * w3[0]
                + jnp.eye(in_dim, k=-1, dtype=F32) * w3[2])

    def xavier(fi, fo):
        a = (6.0 / (fi + fo)) ** 0.5
        return jax.random.uniform(next(keys), (fi, fo), F32, -a, a)

    enc = {'q_w': xavier(H, H), 'k_w': xavier(H, H), 'v_w': xavier(H, H),
           'merge_w': xavier(H, H),
           'mlp1_w': xavier(2 * H, 2 * H), 'mlp2_w': xavier(2 * H, H),
           'ln1_g': jnp.ones((H,), F32), 'ln1_b': jnp.zeros((H,), F32),
           'ln2_g': jnp.ones((H,), F32), 'ln2_b': jnp.zeros((H,), F32)}

    mefg_p = {'conv_M0': band(conv_w[0, 0]), 'conv_M1': band(conv_w[0, 1]),
              'conv_b': conv_bias[0],
              'ep2': lin(in_dim, H), 'ep3': lin(in_dim, H), 'ep4': lin(H, H),
              'bn_lr_e': bn(H),
              'global_layers': [ggcn_p(H, H) for _ in range(global_layer_num)],
              'crosst': {'enc': enc, 'layer_nums': 1}}

    layers = [ggcn_p(H, H) for _ in range(n_layers - 1)] + [ggcn_p(H, out_dim)]
    mlp = [lin(out_dim, out_dim // 2), lin(out_dim // 2, out_dim // 4),
           lin(out_dim // 4, n_classes)]

    return {'hidden_dim': H, 'edge_thresh': 0.3,
            'ttp': ttp_p, 'mefg': mefg_p,
            'emb_h': lin(in_dim, H),
            'layers': layers, 'mlp': mlp}


# ----------------------------------------------------------------------------
# Demo
# ----------------------------------------------------------------------------

if __name__ == "__main__":
    key = jax.random.PRNGKey(0)
    B = 2               # number of graphs in the DGL batch
    N = 16              # max_node_num (padding size)
    in_dim = 8
    hidden_dim = 32
    out_dim = 32
    n_classes = 10
    n_layers = 2

    kp, kf, ka = jax.random.split(key, 3)
    params = init_params(kp, in_dim, hidden_dim, out_dim, n_classes, n_layers)

    # Graph sizes (second graph padded, to exercise masking).
    n_nodes = jnp.array([16, 12], dtype=jnp.int32)
    node_mask = (jnp.arange(N)[None, :] < n_nodes[:, None]).astype(F32)

    feat = jax.random.normal(kf, (B, N, in_dim), F32) * node_mask[..., None]

    # Random initial adjacency among real nodes, no self loops.
    adj = jax.random.bernoulli(ka, 0.3, (B, N, N)).astype(F32)
    adj = adj * (1.0 - jnp.eye(N, dtype=F32)[None])
    adj = adj * node_mask[:, :, None] * node_mask[:, None, :]

    # src_tile=8 -> 2 source tiles, exercising the reduction-axis tiling path.
    logits = gated_gcn_net(params, feat, adj, node_mask, src_tile=8)
    logits = jax.block_until_ready(logits)

    assert logits.shape == (B, n_classes)
    assert bool(jnp.all(jnp.isfinite(logits)))
    print("KERNEL_OK")
</pallas_src>

<mosaic_0001>
module attributes {stable_mosaic.version = 11 : i64} {
  func.func @_linear_kernel(%arg0: i32, %arg1: memref<32x8xbf16, #tpu.memory_space<vmem>>, %arg2: memref<8x1024xbf16, #tpu.memory_space<vmem>>, %arg3: memref<1x1024xf32, #tpu.memory_space<vmem>>, %arg4: memref<32x1024xf32, #tpu.memory_space<vmem>>) attributes {dimension_semantics = [#tpu.dimension_semantics<parallel>], iteration_bounds = array<i64: 1>, scalar_prefetch = 0 : i64, scratch_operands = 0 : i64, tpu.core_type = #tpu.core_type<tc>, window_params = [{transform_indices = @transform_0, window_bounds = array<i64: 32, 8>}, {pipeline_mode = #tpu.pipeline_mode<synchronous>, transform_indices = @transform_1, window_bounds = array<i64: 8, 1024>}, {pipeline_mode = #tpu.pipeline_mode<synchronous>, transform_indices = @transform_2, window_bounds = array<i64: 1, 1024>}, {transform_indices = @transform_3, window_bounds = array<i64: 32, 1024>}]} {
    %c0 = arith.constant 0 : index
    %c0_0 = arith.constant 0 : index
    %0 = vector.load %arg1[%c0, %c0_0] : memref<32x8xbf16, #tpu.memory_space<vmem>>, vector<32x8xbf16>
    %c0_1 = arith.constant 0 : index
    %c0_2 = arith.constant 0 : index
    %1 = vector.load %arg2[%c0_1, %c0_2] : memref<8x1024xbf16, #tpu.memory_space<vmem>>, vector<8x1024xbf16>
    %cst = arith.constant dense<0.000000e+00> : vector<32x1024xf32>
    %2 = tpu.matmul %0, %1, %cst {dimension_numbers = #tpu.dot_dimension_numbers<[1], [0], [0], [1], [0, 0, 1, 1], [], []>} : vector<32x8xbf16>, vector<8x1024xbf16>, vector<32x1024xf32> -> vector<32x1024xf32>
    %c0_3 = arith.constant 0 : index
    %c0_4 = arith.constant 0 : index
    %3 = vector.load %arg3[%c0_3, %c0_4] : memref<1x1024xf32, #tpu.memory_space<vmem>>, vector<1x1024xf32>
    %4 = vector.broadcast %3 : vector<1x1024xf32> to vector<32x1024xf32>
    %5 = arith.addf %2, %4 : vector<32x1024xf32>
    %c0_5 = arith.constant 0 : index
    %c0_6 = arith.constant 0 : index
    %6 = vector.load %arg4[%c0_5, %c0_6] : memref<32x1024xf32, #tpu.memory_space<vmem>>, vector<32x1024xf32>
    tpu.vector_store %arg4[%c0_5, %c0_6], %5 {strides = array<i32>} : memref<32x1024xf32, #tpu.memory_space<vmem>>, vector<32x1024xf32>,
    return
  }
  func.func @transform_0(%arg0: i32) -> (i32, i32) {
    %c0_i32 = arith.constant 0 : i32
    %c0_i32_0 = arith.constant 0 : i32
    return %arg0, %c0_i32 : i32, i32
  }
  func.func @transform_1(%arg0: i32) -> (i32, i32) {
    %c0_i32 = arith.constant 0 : i32
    %c0_i32_0 = arith.constant 0 : i32
    %c0_i32_1 = arith.constant 0 : i32
    return %c0_i32, %c0_i32_0 : i32, i32
  }
  func.func @transform_2(%arg0: i32) -> (i32, i32) {
    %c0_i32 = arith.constant 0 : i32
    %c0_i32_0 = arith.constant 0 : i32
    %c0_i32_1 = arith.constant 0 : i32
    return %c0_i32, %c0_i32_0 : i32, i32
  }
  func.func @transform_3(%arg0: i32) -> (i32, i32) {
    %c0_i32 = arith.constant 0 : i32
    %c0_i32_0 = arith.constant 0 : i32
    return %arg0, %c0_i32 : i32, i32
  }
}

</mosaic_0001>

<bundles_post_ra>
// kernel: tpu_custom_call.1
= control target key start
LH: loop header
LB: loop body
LE: loop exit
PB: predicated region body
PF: predicated region fallthrough
CT: control target
= control target key end

     0   :  { %8 = vsyncpa [#allocation3], 0  ;;  %s673_s0 = inlined_call_operand.hbm [shape: bf16[32,8], index: 0, kind: input, shape index: {}]   ;;  %s674_s1 = inlined_call_operand.hbm [shape: bf16[8,1024], index: 1, kind: input, shape index: {}]   ;;  %s675_s2 = inlined_call_operand.hbm [shape: f32[1,1024], index: 2, kind: input, shape index: {}]   ;;  %s676_s3 = inlined_call_operand.hbm [shape: f32[32,1024], index: 3, kind: output, shape index: {}]  }
   0x1   :  { %9 = vsyncpa [#allocation6], 0 }
   0x2   :  { %10 = vsyncpa [#allocation4], 0  ;;  %s561_s12 = smov [#allocation5]   ;;  %s562_s14 = smov [#allocation2]  }
   0x3   :  { %s29_s13 = sshll.u32 %s561_s12, 4  ;;  %s16_s15 = sshll.u32 %s562_s14, 4  ;;  %s30_s13 = int_to_ptr.vmem [resolvable:$true] %s29_s13  ;;  %s589_s15 = int_to_ptr.vmem [resolvable:$true] %s16_s15 }
   0x4   :  { %s467_s18 = scalar_lea.hbm %s674_s1, 512 }
   0x5   :  { %p468_p0 = scmp.ne.s32.totalorder %s674_s1, %s467_s18  ;;  %p471_p1 = scmp.lt.u32.totalorder %s467_s18, %s674_s1 }
   0x7   :  { %p473_p2 = pnand %p471_p1, %p468_p0 }
   0x9   :  { %476 = shalt.err (!%p473_p2)
}
   0xa   :  { %s477_s23 = scalar_lea.vmem %s30_s13, 512  ;;  %p482_p4 = scmp.lt.s32.totalorder %s30_s13, %s30_s13 }
   0xb   :  { %p478_p3 = scmp.ne.s32.totalorder %s30_s13, %s477_s23  ;;  %p483_p5 = scmp.lt.s32.totalorder %s477_s23, %s477_s23 }
   0xd   :  { %p484_p6 = por %p483_p5, %p482_p4 }
   0xf   :  { %p485_p7 = pnand %p484_p6, %p478_p3 }
  0x11   :  { %488 = shalt.err (!%p485_p7)
}
  0x12   :  { %32 = dma.hbm_to_vmem [thread:$0]  %s674_s1, 512, %s30_s13, [#allocation6]  }
  0x13   :  { %s489_s28 = scalar_lea.hbm %s673_s0, 256 }
  0x14   :  { %p490_p8 = scmp.ne.s32.totalorder %s673_s0, %s489_s28  ;;  %p493_p9 = scmp.lt.u32.totalorder %s489_s28, %s673_s0 }
  0x16   :  { %p495_p10 = pnand %p493_p9, %p490_p8 }
  0x18   :  { %498 = shalt.err (!%p495_p10)
}
  0x19   :  { %s499_s6 = scalar_lea.vmem %s589_s15, 256  ;;  %p504_p12 = scmp.lt.s32.totalorder %s589_s15, %s589_s15 }
  0x1a   :  { %p500_p11 = scmp.ne.s32.totalorder %s589_s15, %s499_s6  ;;  %p505_p13 = scmp.lt.s32.totalorder %s499_s6, %s499_s6 }
  0x1c   :  { %p506_p0 = por %p505_p13, %p504_p12 }
  0x1e   :  { %p507_p1 = pnand %p506_p0, %p500_p11 }
  0x20   :  { %510 = shalt.err (!%p507_p1)
}
  0x21   :  { %s563_s1 = smov 64   ;;  %s564_s7 = smov 4  }
  0x22   :  { %22 = dma.hbm_to_vmem [thread:$0]  %s673_s0, 256, %s589_s15, [#allocation3], %s563_s1, %s563_s1, %s564_s7  }
  0x23   :  { %s565_s10 = smov [#allocation7]   ;;  %s511_s14 = scalar_lea.hbm %s675_s2, 128 }
  0x24   :  { %s39_s11 = sshll.u32 %s565_s10, 4  ;;  %p512_p2 = scmp.ne.s32.totalorder %s675_s2, %s511_s14  ;;  %s40_s11 = int_to_ptr.vmem [resolvable:$true] %s39_s11 }
  0x25   :  { %p515_p3 = scmp.lt.u32.totalorder %s511_s14, %s675_s2 }
  0x27   :  { %p517_p4 = pnand %p515_p3, %p512_p2 }
  0x29   :  { %520 = shalt.err (!%p517_p4)
}
  0x2a   :  { %s521_s20 = scalar_lea.vmem %s40_s11, 128  ;;  %p526_p6 = scmp.lt.s32.totalorder %s40_s11, %s40_s11 }
  0x2b   :  { %p522_p5 = scmp.ne.s32.totalorder %s40_s11, %s521_s20  ;;  %p527_p7 = scmp.lt.s32.totalorder %s521_s20, %s521_s20 }
  0x2d   :  { %p528_p8 = por %p527_p7, %p526_p6 }
  0x2f   :  { %p529_p9 = pnand %p528_p8, %p522_p5 }
  0x31   :  { %532 = shalt.err (!%p529_p9)
}
  0x32   :  { %42 = dma.hbm_to_vmem [thread:$0]  %s675_s2, 128, %s40_s11, [#allocation6]  }
  0x33   :  { %555 = dma.done.wait [#allocation3], 256  }
  0x34   :  { %556 = vsyncadd [#allocation3], 4294967040 }
  0x35   :  { %557 = dma.done.wait [#allocation6], 640  }
  0x36   :  { %558 = vsyncadd [#allocation6], 4294966656  ;;  %v566_v0 = vmov 0   ;;  %v57_v1 = vld [vmem:[#allocation5] sm:$0xff]  ;;  %vm140_vm0 = vcmask 1043456   ;;  %v58_v2 = vld [vmem:[#allocation5 + $0x8] sm:$0xff]  ;;  %v63_v19 = vlaneseq }
  0x37   :  { %197 = vmatprep.mubr.bf16.mxu0 %v566_v0  ;;  %250 = vmatprep.mubr.bf16.mxu1 %v566_v0  ;;  %v430_v3 = vcombine.high %v57_v1, %v57_v1  ;;  %v432_v4 = vcombine.high %v58_v2, %v58_v2  ;;  %v429_v5 = vcombine.low %v57_v1, %v57_v1  ;;  %v59_v7 = vld [vmem:[#allocation5 + $0x10] sm:$0xff]  ;;  %v60_v9 = vld [vmem:[#allocation5 + $0x18] sm:$0xff]  ;;  %vm133_vm1 = vcmask 64512   ;;  %v61_v23 = vld [vmem:[#allocation7] sm:$0xff]  ;;  %s567_s2 = smov [#allocation8]  }
  0x38   :  { %v431_v6 = vcombine.low %v58_v2, %v58_v2  ;;  %v434_v8 = vcombine.high %v59_v7, %v59_v7  ;;  %v433_v10 = vcombine.low %v59_v7, %v59_v7  ;;  %v461_v13 = vld [vmem:[#allocation2] sm:$0xff]   ;;  %v436_v14 = vcombine.high %v60_v9, %v60_v9  ;;  %v466_v18 = vld [vmem:[#allocation2 + $0x8] sm:$0xff]   ;;  %s414_s21 = sshll.u32 %s567_s2, 4  ;;  %s415_s21 = int_to_ptr.vmem [resolvable:$true] %s414_s21 }
  0x39   :  { %437 = vmatprep.subr.msk.bf16.mxu0 %vm140_vm0, %v430_v3  ;;  %440 = vmatprep.subr.msk.bf16.mxu1 %vm140_vm0, %v432_v4  ;;  %v142_v11 = vsel %vm140_vm0, %v429_v5, 0  ;;  %v435_v15 = vcombine.low %v60_v9, %v60_v9  ;;  %v650_v20 = vshrl.u32 %v63_v19, 7  ;;  %s533_s22 = scalar_lea.vmem %s415_s21, 4096  ;;  %p538_p11 = scmp.lt.s32.totalorder %s415_s21, %s415_s21 }
  0x3a   :  { %v148_v12 = vsel %vm140_vm0, %v431_v6, 0  ;;  %166 = vmatpush1.bf16.msra.mxu0 %v142_v11  ;;  %v154_v16 = vsel %vm140_vm0, %v433_v10, 0  ;;  %p534_p10 = scmp.ne.s32.totalorder %s415_s21, %s533_s22  ;;  %p539_p12 = scmp.lt.s32.totalorder %s533_s22, %s533_s22 }
  0x3b   :  { %219 = vmatpush1.bf16.msra.mxu1 %v148_v12  ;;  %443 = vmatprep.subr.msk.bf16.mxu0 %vm140_vm0, %v434_v8  ;;  %v160_v17 = vsel %vm140_vm0, %v435_v15, 0  ;;  %v65_v21 = vsub.s32 0, %v650_v20  ;;  %v73_v22 = vsub.s32 2, %v650_v20  ;;  %v69_v24 = vsub.s32 1, %v650_v20 }
  0x3c   :  { %446 = vmatprep.subr.msk.bf16.mxu1 %vm140_vm0, %v436_v14  ;;  %v77_v25 = vsub.s32 3, %v650_v20  ;;  %v81_v52 = vsub.s32 4, %v650_v20  ;;  %v89_v53 = vsub.s32 6, %v650_v20  ;;  %v85_v58 = vsub.s32 5, %v650_v20  ;;  %p540_p13 = por %p539_p12, %p538_p11 }
  0x3d   :  { %438 = vmatmul.mubr.msk.bf16.vlgmr.msra.gmra.mrb[0].mxu0 %vm133_vm1, %v461_v13  ;;  %v66_v26 = vrot.slane %v61_v23, %v65_v21  ;;  %v74_v27 = vrot.slane %v61_v23, %v73_v22  ;;  %v70_v28 = vrot.slane %v61_v23, %v69_v24  ;;  %v93_v59 = vsub.s32 7, %v650_v20 }
  0x3e   :  { %441 = vmatmul.mubr.msk.bf16.vlgmr.msra.gmra.mrb[0].mxu1 %vm133_vm1, %v461_v13  ;;  %272 = vmatpush1.bf16.msra.mxu0 %v154_v16  ;;  %v78_v29 = vrot.slane %v61_v23, %v77_v25  ;;  %v82_v2 = vrot.slane %v61_v23, %v81_v52  ;;  %v90_v3 = vrot.slane %v61_v23, %v89_v53  ;;  %p541_p0 = pnand %p540_p13, %p534_p10 }
  0x3f   :  { %325 = vmatpush1.bf16.msra.mxu1 %v160_v17  ;;  %207 = vmatprep.mubr.bf16.mxu0 %v566_v0  ;;  %v86_v4 = vrot.slane %v61_v23, %v85_v58  ;;  %v94_v5 = vrot.slane %v61_v23, %v93_v59 }
  0x40   :  { %260 = vmatprep.mubr.bf16.mxu1 %v566_v0 }
  0x45   :  { %439 = vmatmul.mubr.msk.bf16.gmra.mrb[4].mxu0 %vm133_vm1, %v466_v18 }
  0x46   :  { %442 = vmatmul.mubr.msk.bf16.gmra.mrb[4].mxu1 %vm133_vm1, %v466_v18  ;;  %303 = vmatprep.mubr.bf16.mxu0 %v566_v0 }
  0x47   :  { %356 = vmatprep.mubr.bf16.mxu1 %v566_v0 }
  0x4d   :  { %444 = vmatmul.mubr.msk.bf16.vlgmr.msra.gmra.mrb[8].mxu0 %vm133_vm1, %v461_v13 }
  0x4e   :  { %447 = vmatmul.mubr.msk.bf16.vlgmr.msra.gmra.mrb[8].mxu1 %vm133_vm1, %v461_v13  ;;  %313 = vmatprep.mubr.bf16.mxu0 %v566_v0 }
  0x4f   :  { %366 = vmatprep.mubr.bf16.mxu1 %v566_v0 }
  0x55   :  { %445 = vmatmul.mubr.msk.bf16.gmra.mrb[12].mxu0 %vm133_vm1, %v466_v18 }
  0x56   :  { %448 = vmatmul.mubr.msk.bf16.gmra.mrb[12].mxu1 %vm133_vm1, %v466_v18 }
 0x110   :  { %v199_v30 = vpop.f32.mrb[0].mxu0 }
 0x111   :  { %v252_v31 = vpop.f32.mrb[0].mxu1  ;;  %v200_v32 = vadd.f32 %v199_v30, %v66_v26  ;;  %v201_v34 = vpop.f32.mrb[1].mxu0 }
 0x112   :  { %v253_v33 = vadd.f32 %v252_v31, %v74_v27  ;;  %v254_v35 = vpop.f32.mrb[1].mxu1  ;;  %v202_v36 = vadd.f32 %v201_v34, %v70_v28  ;;  %v203_v38 = vpop.f32.mrb[2].mxu0 }
 0x113   :  { %v255_v37 = vadd.f32 %v254_v35, %v78_v29  ;;  %v256_v39 = vpop.f32.mrb[2].mxu1  ;;  %377 = vst [vmem:[#allocation8] sm:$0xff] %v200_v32  ;;  %v204_v40 = vadd.f32 %v203_v38, %v66_v26  ;;  %v205_v42 = vpop.f32.mrb[3].mxu0 }
 0x114   :  { %379 = vst [vmem:[#allocation8 + $0x10] sm:$0xff] %v253_v33  ;;  %v257_v41 = vadd.f32 %v256_v39, %v74_v27  ;;  %v258_v43 = vpop.f32.mrb[3].mxu1  ;;  %378 = vst [vmem:[#allocation8 + $0x8] sm:$0xff] %v202_v36  ;;  %v206_v44 = vadd.f32 %v205_v42, %v70_v28 }
 0x115   :  { %380 = vst [vmem:[#allocation8 + $0x18] sm:$0xff] %v255_v37  ;;  %v259_v45 = vadd.f32 %v258_v43, %v78_v29  ;;  %385 = vst [vmem:[#allocation8 + $0x40] sm:$0xff] %v204_v40 }
 0x116   :  { %387 = vst [vmem:[#allocation8 + $0x50] sm:$0xff] %v257_v41  ;;  %386 = vst [vmem:[#allocation8 + $0x48] sm:$0xff] %v206_v44 }
 0x117   :  { %388 = vst [vmem:[#allocation8 + $0x58] sm:$0xff] %v259_v45 }
 0x118   :  { %v209_v46 = vpop.f32.mrb[4].mxu0 }
 0x119   :  { %v262_v47 = vpop.f32.mrb[4].mxu1  ;;  %v210_v48 = vadd.f32 %v209_v46, %v66_v26  ;;  %v211_v50 = vpop.f32.mrb[5].mxu0 }
 0x11a   :  { %v263_v49 = vadd.f32 %v262_v47, %v74_v27  ;;  %v264_v51 = vpop.f32.mrb[5].mxu1  ;;  %v212_v54 = vadd.f32 %v211_v50, %v70_v28  ;;  %v213_v56 = vpop.f32.mrb[6].mxu0 }
 0x11b   :  { %v265_v55 = vadd.f32 %v264_v51, %v78_v29  ;;  %v266_v57 = vpop.f32.mrb[6].mxu1  ;;  %393 = vst [vmem:[#allocation8 + $0x80] sm:$0xff] %v210_v48  ;;  %v214_v60 = vadd.f32 %v213_v56, %v66_v26  ;;  %v215_v62 = vpop.f32.mrb[7].mxu0 }
 0x11c   :  { %395 = vst [vmem:[#allocation8 + $0x90] sm:$0xff] %v263_v49  ;;  %v267_v61 = vadd.f32 %v266_v57, %v74_v27  ;;  %v268_v63 = vpop.f32.mrb[7].mxu1  ;;  %394 = vst [vmem:[#allocation8 + $0x88] sm:$0xff] %v212_v54  ;;  %v216_v0 = vadd.f32 %v215_v62, %v70_v28 }
 0x11d   :  { %396 = vst [vmem:[#allocation8 + $0x98] sm:$0xff] %v265_v55  ;;  %v269_v1 = vadd.f32 %v268_v63, %v78_v29  ;;  %401 = vst [vmem:[#allocation8 + $0xc0] sm:$0xff] %v214_v60 }
 0x11e   :  { %403 = vst [vmem:[#allocation8 + $0xd0] sm:$0xff] %v267_v61  ;;  %402 = vst [vmem:[#allocation8 + $0xc8] sm:$0xff] %v216_v0 }
 0x11f   :  { %404 = vst [vmem:[#allocation8 + $0xd8] sm:$0xff] %v269_v1 }
 0x120   :  { %v305_v6 = vpop.f32.mrb[8].mxu0 }
 0x121   :  { %v358_v7 = vpop.f32.mrb[8].mxu1  ;;  %v306_v8 = vadd.f32 %v305_v6, %v82_v2  ;;  %v307_v10 = vpop.f32.mrb[9].mxu0 }
 0x122   :  { %v359_v9 = vadd.f32 %v358_v7, %v90_v3  ;;  %v360_v11 = vpop.f32.mrb[9].mxu1  ;;  %v308_v12 = vadd.f32 %v307_v10, %v86_v4  ;;  %v309_v14 = vpop.f32.mrb[10].mxu0 }
 0x123   :  { %v361_v13 = vadd.f32 %v360_v11, %v94_v5  ;;  %v362_v15 = vpop.f32.mrb[10].mxu1  ;;  %381 = vst [vmem:[#allocation8 + $0x20] sm:$0xff] %v306_v8  ;;  %v310_v16 = vadd.f32 %v309_v14, %v82_v2  ;;  %v311_v18 = vpop.f32.mrb[11].mxu0 }
 0x124   :  { %383 = vst [vmem:[#allocation8 + $0x30] sm:$0xff] %v359_v9  ;;  %v363_v17 = vadd.f32 %v362_v15, %v90_v3  ;;  %v364_v19 = vpop.f32.mrb[11].mxu1  ;;  %382 = vst [vmem:[#allocation8 + $0x28] sm:$0xff] %v308_v12  ;;  %v312_v20 = vadd.f32 %v311_v18, %v86_v4 }
 0x125   :  { %384 = vst [vmem:[#allocation8 + $0x38] sm:$0xff] %v361_v13  ;;  %v365_v21 = vadd.f32 %v364_v19, %v94_v5  ;;  %389 = vst [vmem:[#allocation8 + $0x60] sm:$0xff] %v310_v16 }
 0x126   :  { %391 = vst [vmem:[#allocation8 + $0x70] sm:$0xff] %v363_v17  ;;  %390 = vst [vmem:[#allocation8 + $0x68] sm:$0xff] %v312_v20 }
 0x127   :  { %392 = vst [vmem:[#allocation8 + $0x78] sm:$0xff] %v365_v21 }
 0x128   :  { %v315_v22 = vpop.f32.mrb[12].mxu0 }
 0x129   :  { %v368_v23 = vpop.f32.mrb[12].mxu1  ;;  %v316_v24 = vadd.f32 %v315_v22, %v82_v2  ;;  %v317_v26 = vpop.f32.mrb[13].mxu0 }
 0x12a   :  { %v369_v25 = vadd.f32 %v368_v23, %v90_v3  ;;  %v370_v27 = vpop.f32.mrb[13].mxu1  ;;  %v318_v28 = vadd.f32 %v317_v26, %v86_v4  ;;  %v319_v30 = vpop.f32.mrb[14].mxu0 }
 0x12b   :  { %v371_v29 = vadd.f32 %v370_v27, %v94_v5  ;;  %v372_v31 = vpop.f32.mrb[14].mxu1  ;;  %397 = vst [vmem:[#allocation8 + $0xa0] sm:$0xff] %v316_v24  ;;  %v320_v32 = vadd.f32 %v319_v30, %v82_v2  ;;  %v321_v34 = vpop.f32.mrb[15].mxu0 }
 0x12c   :  { %399 = vst [vmem:[#allocation8 + $0xb0] sm:$0xff] %v369_v25  ;;  %v373_v33 = vadd.f32 %v372_v31, %v90_v3  ;;  %v374_v35 = vpop.f32.mrb[15].mxu1  ;;  %398 = vst [vmem:[#allocation8 + $0xa8] sm:$0xff] %v318_v28  ;;  %v322_v36 = vadd.f32 %v321_v34, %v86_v4 }
 0x12d   :  { %400 = vst [vmem:[#allocation8 + $0xb8] sm:$0xff] %v371_v29  ;;  %v375_v37 = vadd.f32 %v374_v35, %v94_v5  ;;  %405 = vst [vmem:[#allocation8 + $0xe0] sm:$0xff] %v320_v32 }
 0x12e   :  { %407 = vst [vmem:[#allocation8 + $0xf0] sm:$0xff] %v373_v33  ;;  %406 = vst [vmem:[#allocation8 + $0xe8] sm:$0xff] %v322_v36 }
 0x12f   :  { %408 = vst [vmem:[#allocation8 + $0xf8] sm:$0xff] %v375_v37 }
 0x130   :  { %544 = shalt.err (!%p541_p0)
}
 0x131   :  { %s545_s25 = scalar_lea.hbm %s676_s3, 4096 }
 0x132   :  { %p546_p1 = scmp.ne.s32.totalorder %s676_s3, %s545_s25  ;;  %p549_p2 = scmp.lt.u32.totalorder %s545_s25, %s676_s3 }
 0x134   :  { %p551_p3 = pnand %p549_p2, %p546_p1 }
 0x136   :  { %554 = shalt.err (!%p551_p3)
}
 0x137   :  { %s568_s30 = smov 1024  }
 0x138   :  { %420 = dma.vmem_to_hbm [thread:$0]  %s415_s21, 4096, %s676_s3, [#allocation4], %s568_s30, %s568_s30, %s563_s1  }
 0x139   :  { %559 = dma.done.wait [#allocation4], 4096  }
 0x13a   :  { %560 = vsyncadd [#allocation4], 4294963200 }
 0x13b   :  { %424 = vsyncpa [#allocation3], 1 }
 0x13c   :  { %425 = vsyncpa [#allocation6], 1 }
 0x13d   :  { %426 = vsyncpa [#allocation4], 1 }

</bundles_post_ra>
